<compile_context>
chip_gen: v6e
topology: v6e:2x2x1
jax: 0.10.0
libtpu: 0.0.40
codegen_flags: <defaults>
</compile_context>

<pallas_src>
import functools

import jax
import jax.numpy as jnp
from jax.experimental import pallas as pl
from jax.experimental.pallas import tpu as pltpu


def _round_up(a, b):
    return ((a + b - 1) // b) * b


def _mse_partial_kernel(x_ref, y_ref, o_ref, *, rows, cols, tile_r, tile_c,
                        need_row_mask, need_col_mask):
    """Per-block partial sum of (x - y)^2, reduced to an (8, tile_c) f32 slab."""
    x = x_ref[...].astype(jnp.float32)
    y = y_ref[...].astype(jnp.float32)
    d = x - y
    if need_row_mask or need_col_mask:
        mask = None
        if need_row_mask:
            r0 = pl.program_id(0) * tile_r
            rid = r0 + jax.lax.broadcasted_iota(jnp.int32, (tile_r, tile_c), 0)
            mask = rid < rows
        if need_col_mask:
            c0 = pl.program_id(1) * tile_c
            cid = c0 + jax.lax.broadcasted_iota(jnp.int32, (tile_r, tile_c), 1)
            cmask = cid < cols
            mask = cmask if mask is None else jnp.logical_and(mask, cmask)
        # Mask BEFORE squaring so OOB garbage (even NaN/Inf) never propagates.
        d = jnp.where(mask, d, 0.0)
    sq = d * d
    # (tile_r, tile_c) -> (8, tile_c): layout-preserving sublane-group split
    # followed by pure VPU vreg adds (no XLU in the kernel).
    o_ref[...] = jnp.sum(sq.reshape(tile_r // 8, 8, tile_c), axis=0)


def mse_loss_sum(logits, labels, *, tile_r_cap=512, tile_c_cap=2048):
    assert logits.shape == labels.shape, (logits.shape, labels.shape)
    out_dtype = logits.dtype
    n = logits.size
    if n == 0:
        # Degenerate input: torch returns 0 for an empty 'sum' reduction.
        return jnp.zeros((), dtype=out_dtype)

    itemsize = jnp.dtype(logits.dtype).itemsize
    # Packed-sublane multiple of the *input* dtype: 8 (4B), 16 (2B), 32 (1B).
    sub = max(8, 32 // max(1, itemsize))

    # --- 2-D (rows, cols) view: metadata-only reshape, never a pad copy. ---
    if logits.ndim >= 2 and logits.shape[-1] % 128 == 0:
        cols = logits.shape[-1]
        rows = n // cols
    else:
        # Non-lane-aligned last dim (or 1-D): view as one long row and let the
        # column tiling + in-kernel column mask handle the ragged edge.
        rows, cols = 1, n
    x2 = logits.reshape(rows, cols)
    y2 = labels.reshape(rows, cols)

    # --- Tile sizing: ~2 MiB per input per pipeline buffer. ---
    budget_bytes = 2 * 1024 * 1024
    if rows <= sub:
        # Single-row-ish view: widen the column tile so wide flat inputs still
        # amortize the fixed per-grid-step pipeline overhead.
        cap_c = max(tile_c_cap,
                    min(16384, (budget_bytes // (sub * itemsize)) // 128 * 128))
    else:
        cap_c = max(128, (tile_c_cap // 128) * 128)
    tile_c = min(_round_up(cols, 128), cap_c)

    max_r_budget = max(sub, (budget_bytes // (tile_c * itemsize)) // sub * sub)
    tile_r_cap = max(sub, (tile_r_cap // sub) * sub)
    tile_r = max(sub, min(tile_r_cap, max_r_budget, _round_up(rows, sub)))

    num_rb = pl.cdiv(rows, tile_r)
    num_cb = pl.cdiv(cols, tile_c)
    need_row_mask = (rows % tile_r) != 0
    need_col_mask = (cols % tile_c) != 0

    kernel = functools.partial(
        _mse_partial_kernel,
        rows=rows, cols=cols, tile_r=tile_r, tile_c=tile_c,
        need_row_mask=need_row_mask, need_col_mask=need_col_mask,
    )

    partials = pl.pallas_call(
        kernel,
        out_shape=jax.ShapeDtypeStruct((num_rb * 8, num_cb * tile_c), jnp.float32),
        grid=(num_rb, num_cb),
        in_specs=[
            pl.BlockSpec((tile_r, tile_c), lambda i, j: (i, j)),
            pl.BlockSpec((tile_r, tile_c), lambda i, j: (i, j)),
        ],
        out_specs=pl.BlockSpec((8, tile_c), lambda i, j: (i, j)),
        compiler_params=pltpu.CompilerParams(
            dimension_semantics=("parallel", "parallel"),
            vmem_limit_bytes=32 * 1024 * 1024,
        ),
    )(x2, y2)

    # Tiny final cross-block / cross-lane reduction (f32), done once.
    total = jnp.sum(partials)
    # torch.nn.MSELoss(reduction='sum') returns the input dtype.
    return total.astype(out_dtype)


if __name__ == "__main__":
    key = jax.random.PRNGKey(0)
    k1, k2, k3, k4, k5, k6 = jax.random.split(key, 6)

    # 1) Small (batch, seq, hidden) logits with a non-128-aligned hidden dim
    #    -> flat single-row view + in-kernel row/column masking (no pad copy).
    logits = jax.random.normal(k1, (2, 8, 32), dtype=jnp.float32)
    labels = jax.random.normal(k2, (2, 8, 32), dtype=jnp.float32)
    loss = mse_loss_sum(logits, labels)
    jax.block_until_ready(loss)
    ref = jnp.sum((logits - labels) ** 2)
    assert jnp.allclose(loss, ref, rtol=1e-5, atol=1e-4), (loss, ref)

    # 2) Lane-aligned hidden dim with a row count (5*7=35) that is NOT a
    #    multiple of the tile -> zero-copy path + ragged-row mask.
    x2 = jax.random.normal(k3, (5, 7, 128), dtype=jnp.float32)
    y2 = jax.random.normal(k4, (5, 7, 128), dtype=jnp.float32)
    loss2 = mse_loss_sum(x2, y2, tile_r_cap=16)
    jax.block_until_ready(loss2)
    ref2 = jnp.sum((x2 - y2) ** 2)
    assert jnp.allclose(loss2, ref2, rtol=2e-5, atol=1e-3), (loss2, ref2)

    # 3) Wide lane-aligned last dim -> exercises the 2-D (row x col) tiling
    #    with a ragged last column block.
    x3 = jax.random.normal(k5, (4, 4, 2560), dtype=jnp.float32)
    y3 = jax.random.normal(k6, (4, 4, 2560), dtype=jnp.float32)
    loss3 = mse_loss_sum(x3, y3, tile_c_cap=2048)
    jax.block_until_ready(loss3)
    ref3 = jnp.sum((x3 - y3) ** 2)
    assert jnp.allclose(loss3, ref3, rtol=2e-5, atol=1e-3), (loss3, ref3)

    print("KERNEL_OK")
</pallas_src>

<mosaic_0001>
module attributes {stable_mosaic.version = 11 : i64} {
  func.func @_mse_partial_kernel(%arg0: i32, %arg1: i32, %arg2: memref<8x512xf32, #tpu.memory_space<vmem>>, %arg3: memref<8x512xf32, #tpu.memory_space<vmem>>, %arg4: memref<8x512xf32, #tpu.memory_space<vmem>>) attributes {dimension_semantics = [#tpu.dimension_semantics<parallel>, #tpu.dimension_semantics<parallel>], iteration_bounds = array<i64: 1, 1>, scalar_prefetch = 0 : i64, scratch_operands = 0 : i64, tpu.core_type = #tpu.core_type<tc>, window_params = [{transform_indices = @transform_0, window_bounds = array<i64: 8, 512>}, {transform_indices = @transform_1, window_bounds = array<i64: 8, 512>}, {transform_indices = @transform_2, window_bounds = array<i64: 8, 512>}]} {
    %c0 = arith.constant 0 : index
    %c0_0 = arith.constant 0 : index
    %0 = vector.load %arg2[%c0, %c0_0] : memref<8x512xf32, #tpu.memory_space<vmem>>, vector<8x512xf32>
    %c0_1 = arith.constant 0 : index
    %c0_2 = arith.constant 0 : index
    %1 = vector.load %arg3[%c0_1, %c0_2] : memref<8x512xf32, #tpu.memory_space<vmem>>, vector<8x512xf32>
    %2 = arith.subf %0, %1 : vector<8x512xf32>
    %c8_i32 = arith.constant 8 : i32
    %3 = arith.muli %arg0, %c8_i32 : i32
    %4 = tpu.iota {dimensions = array<i32: 0>} : vector<8x512xi32>
    %5 = vector.broadcast %3 : i32 to vector<8x512xi32>
    %6 = arith.addi %5, %4 : vector<8x512xi32>
    %c1_i32 = arith.constant 1 : i32
    %7 = vector.broadcast %c1_i32 : i32 to vector<8x512xi32>
    %8 = arith.cmpi slt, %6, %7 : vector<8x512xi32>
    %cst = arith.constant 0.000000e+00 : f32
    %9 = vector.broadcast %cst : f32 to vector<8x512xf32>
    %10 = arith.select %8, %2, %9 : vector<8x512xi1>, vector<8x512xf32>
    %11 = arith.mulf %10, %10 : vector<8x512xf32>
    %12 = vector.shape_cast %11 : vector<8x512xf32> to vector<1x8x512xf32>
    %cst_3 = arith.constant dense<0.000000e+00> : vector<8x512xf32>
    %13 = vector.multi_reduction <add>, %12, %cst_3 [0] : vector<1x8x512xf32> to vector<8x512xf32>
    %c0_4 = arith.constant 0 : index
    %c0_5 = arith.constant 0 : index
    %14 = vector.load %arg4[%c0_4, %c0_5] : memref<8x512xf32, #tpu.memory_space<vmem>>, vector<8x512xf32>
    tpu.vector_store %arg4[%c0_4, %c0_5], %13 {strides = array<i32>} : memref<8x512xf32, #tpu.memory_space<vmem>>, vector<8x512xf32>,
    return
  }
  func.func @transform_0(%arg0: i32, %arg1: i32) -> (i32, i32) {
    %c0_i32 = arith.constant 0 : i32
    return %arg0, %arg1 : i32, i32
  }
  func.func @transform_1(%arg0: i32, %arg1: i32) -> (i32, i32) {
    %c0_i32 = arith.constant 0 : i32
    return %arg0, %arg1 : i32, i32
  }
  func.func @transform_2(%arg0: i32, %arg1: i32) -> (i32, i32) {
    %c0_i32 = arith.constant 0 : i32
    return %arg0, %arg1 : i32, i32
  }
}

</mosaic_0001>

<bundles_post_ra>
// kernel: tpu_custom_call.1
= control target key start
LH: loop header
LB: loop body
LE: loop exit
PB: predicated region body
PF: predicated region fallthrough
CT: control target
= control target key end

     0   :  { %7 = vsyncpa [#allocation3], 0  ;;  %s284_s0 = inlined_call_operand.hbm [shape: f32[1,512], index: 0, kind: input, shape index: {}]   ;;  %s285_s1 = inlined_call_operand.hbm [shape: f32[1,512], index: 1, kind: input, shape index: {}]   ;;  %s286_s2 = inlined_call_operand.hbm [shape: f32[8,512], index: 2, kind: output, shape index: {}]  }
   0x1   :  { %8 = vsyncpa [#allocation6], 0 }
   0x2   :  { %9 = vsyncpa [#allocation4], 0 }
   0x3   :  { %14 = vsyncadd [#allocation3], 448  ;;  %s254_s9 = smov [#allocation2]  }
   0x4   :  { %s15_s10 = sshll.u32 %s254_s9, 4  ;;  %s16_s10 = int_to_ptr.vmem [resolvable:$true] %s15_s10 }
   0x5   :  { %s196_s11 = scalar_lea.vmem %s16_s10, 64  ;;  %s200_s12 = scalar_lea.vmem %s16_s10, 512 }
   0x6   :  { %p197_p0 = scmp.ne.s32.totalorder %s16_s10, %s196_s11  ;;  %p201_p1 = scmp.lt.s32.totalorder %s16_s10, %s16_s10 }
   0x7   :  { %p202_p2 = scmp.lt.s32.totalorder %s200_s12, %s196_s11 }
   0x9   :  { %p203_p3 = por %p202_p2, %p201_p1 }
   0xb   :  { %p204_p4 = pnand %p203_p3, %p197_p0 }
   0xd   :  { %207 = shalt.err (!%p204_p4)
}
   0xe   :  { %s255_s13 = smov 64   ;;  %s256_s14 = smov 4  }
   0xf   :  { %21 = dma.hbm_to_vmem [thread:$0]  %s284_s0, 64, %s16_s10, [#allocation3], %s255_s13, %s255_s13, %s256_s14  }
  0x10   :  { %26 = vsyncadd [#allocation6], 448  ;;  %s257_s17 = smov [#allocation5]  }
  0x11   :  { %s27_s18 = sshll.u32 %s257_s17, 4  ;;  %s28_s18 = int_to_ptr.vmem [resolvable:$true] %s27_s18 }
  0x12   :  { %s216_s19 = scalar_lea.vmem %s28_s18, 64  ;;  %s220_s20 = scalar_lea.vmem %s28_s18, 512 }
  0x13   :  { %p217_p5 = scmp.ne.s32.totalorder %s28_s18, %s216_s19  ;;  %p221_p6 = scmp.lt.s32.totalorder %s28_s18, %s28_s18 }
  0x14   :  { %p222_p7 = scmp.lt.s32.totalorder %s220_s20, %s216_s19 }
  0x16   :  { %p223_p8 = por %p222_p7, %p221_p6 }
  0x18   :  { %p224_p9 = pnand %p223_p8, %p217_p5 }
  0x1a   :  { %227 = shalt.err (!%p224_p9)
}
  0x1b   :  { %33 = dma.hbm_to_vmem [thread:$0]  %s285_s1, 64, %s28_s18, [#allocation6], %s255_s13, %s255_s13, %s256_s14  }
  0x1c   :  { %248 = dma.done.wait [#allocation3], 512  }
  0x1d   :  { %249 = vsyncadd [#allocation3], 4294966784 }
  0x1e   :  { %250 = dma.done.wait [#allocation6], 512  }
  0x1f   :  { %251 = vsyncadd [#allocation6], 4294966784  ;;  %v65_v0 = vlaneseq  ;;  %v258_v1 = vmov 1966171168   ;;  %v40_v4 = vld [vmem:[#allocation2] sm:$0xf] }
  0x20   :  { %v83_v2 = vunpack.c.l.s4 %v258_v1  ;;  %v41_v5 = vld [vmem:[#allocation2 + $0x4] sm:$0xf]  ;;  %v42_v6 = vld [vmem:[#allocation2 + $0x8] sm:$0xf]  ;;  %v43_v8 = vld [vmem:[#allocation2 + $0xc] sm:$0xf] }
  0x21   :  { %v66_v3 = vshrl.u32 %v65_v0, 7  ;;  %v44_v9 = vld [vmem:[#allocation2 + $0x10] sm:$0xf]  ;;  %v45_v10 = vld [vmem:[#allocation2 + $0x14] sm:$0xf]  ;;  %s259_s0 = smov [#allocation7]  }
  0x22   :  { %v84_v7 = vunpack.c.0.s8 %v83_v2  ;;  %v46_v11 = vld [vmem:[#allocation2 + $0x18] sm:$0xf]  ;;  %v47_v12 = vld [vmem:[#allocation2 + $0x1c] sm:$0xf]  ;;  %v48_v13 = vld [vmem:[#allocation5] sm:$0xf] }
  0x23   :  { %v49_v14 = vld [vmem:[#allocation5 + $0x4] sm:$0xf]  ;;  %v50_v15 = vld [vmem:[#allocation5 + $0x8] sm:$0xf]  ;;  %v51_v16 = vld [vmem:[#allocation5 + $0xc] sm:$0xf]  ;;  %v56_v17 = vsub.f32 %v40_v4, %v48_v13 }
  0x24   :  { %v52_v18 = vld [vmem:[#allocation5 + $0x10] sm:$0xf]  ;;  %v53_v19 = vld [vmem:[#allocation5 + $0x14] sm:$0xf]  ;;  %v54_v20 = vld [vmem:[#allocation5 + $0x18] sm:$0xf]  ;;  %v57_v21 = vsub.f32 %v41_v5, %v49_v14  ;;  %v58_v22 = vsub.f32 %v42_v6, %v50_v15  ;;  %v59_v23 = vsub.f32 %v43_v8, %v51_v16  ;;  %v87_v24 = vsub.s32 %v84_v7, %v66_v3 }
  0x25   :  { %v55_v25 = vld [vmem:[#allocation5 + $0x1c] sm:$0xf]  ;;  %v60_v26 = vsub.f32 %v44_v9, %v52_v18  ;;  %v61_v27 = vsub.f32 %v45_v10, %v53_v19  ;;  %v62_v28 = vsub.f32 %v46_v11, %v54_v20  ;;  %vm69_vm0 = vcmp.lt.s32.totalorder %v66_v3, 1  ;;  %s172_s1 = sshll.u32 %s259_s0, 4  ;;  %s173_s1 = int_to_ptr.vmem [resolvable:$true] %s172_s1 }
  0x26   :  { %v63_v29 = vsub.f32 %v47_v12, %v55_v25  ;;  %v78_v30 = vcombine.low %v56_v17, %v57_v21  ;;  %v79_v31 = vcombine.low %v58_v22, %v59_v23  ;;  %s228_s23 = scalar_lea.vmem %s173_s1, 512  ;;  %p233_p11 = scmp.lt.s32.totalorder %s173_s1, %s173_s1 }
  0x27   :  { %v80_v32 = vcombine.low %v60_v26, %v61_v27  ;;  %p229_p10 = scmp.ne.s32.totalorder %s173_s1, %s228_s23  ;;  %p234_p12 = scmp.lt.s32.totalorder %s228_s23, %s228_s23 }
  0x28   :  { %v81_v33 = vcombine.low %v62_v28, %v63_v29  ;;  %v88_v34 = vrot.slane %v78_v30, %v87_v24  ;;  %v95_v35 = vrot.slane %v79_v31, %v87_v24 }
  0x29   :  { %v102_v36 = vrot.slane %v80_v32, %v87_v24  ;;  %p235_p13 = por %p234_p12, %p233_p11 }
  0x2a   :  { %v109_v37 = vrot.slane %v81_v33, %v87_v24  ;;  %v110_v38 = vcombine.low %v88_v34, %v95_v35  ;;  %v111_v39 = vcombine.high %v88_v34, %v95_v35 }
  0x2b   :  { %p236_p0 = pnand %p235_p13, %p229_p10 }
  0x2c   :  { %v112_v40 = vcombine.low %v102_v36, %v109_v37  ;;  %v120_v41 = vrot.slane %v110_v38, %v87_v24  ;;  %v113_v42 = vcombine.high %v102_v36, %v109_v37  ;;  %v127_v43 = vrot.slane %v111_v39, %v87_v24 }
  0x2e   :  { %v134_v44 = vrot.slane %v112_v40, %v87_v24  ;;  %v141_v45 = vrot.slane %v113_v42, %v87_v24 }
  0x30   :  { %v142_v46 = vcombine.low %v120_v41, %v134_v44  ;;  %v144_v47 = vcombine.low %v127_v43, %v141_v45  ;;  %v143_v48 = vcombine.high %v120_v41, %v134_v44  ;;  %v145_v49 = vcombine.high %v127_v43, %v141_v45 }
  0x32   :  { %v150_v50 = vsel %vm69_vm0, %v142_v46, 0.0  ;;  %v151_v51 = vsel %vm69_vm0, %v144_v47, 0.0  ;;  %v152_v52 = vsel %vm69_vm0, %v143_v48, 0.0  ;;  %v153_v53 = vsel %vm69_vm0, %v145_v49, 0.0 }
  0x33   :  { %v154_v54 = vmul.f32 %v150_v50, %v150_v50  ;;  %v155_v55 = vmul.f32 %v151_v51, %v151_v51  ;;  %v156_v56 = vmul.f32 %v152_v52, %v152_v52  ;;  %v157_v57 = vmul.f32 %v153_v53, %v153_v53 }
  0x35   :  { %162 = vst [vmem:[#allocation7] sm:$0xff] %v154_v54  ;;  %163 = vst [vmem:[#allocation7 + $0x8] sm:$0xff] %v155_v55 }
  0x36   :  { %164 = vst [vmem:[#allocation7 + $0x10] sm:$0xff] %v156_v56  ;;  %165 = vst [vmem:[#allocation7 + $0x18] sm:$0xff] %v157_v57 }
  0x37   :  { %239 = shalt.err (!%p236_p0)
}
  0x38   :  { %175 = dma.vmem_to_hbm [thread:$0]  %s173_s1, 512, %s286_s2, [#allocation4]  }
  0x39   :  { %252 = dma.done.wait [#allocation4], 512  }
  0x3a   :  { %253 = vsyncadd [#allocation4], 4294966784 }
  0x3b   :  { %179 = vsyncpa [#allocation3], 1 }
  0x3c   :  { %180 = vsyncpa [#allocation6], 1 }
  0x3d   :  { %181 = vsyncpa [#allocation4], 1 }

</bundles_post_ra>
